<compile_context>
chip_gen: v6e
topology: v6e:2x2x1
jax: 0.10.0
libtpu: 0.0.40
codegen_flags: <defaults>
</compile_context>

<pallas_src>
import functools

import jax
import jax.numpy as jnp
from jax.experimental import pallas as pl
from jax.experimental.pallas import tpu as pltpu


def _round_up(x, m):
    return ((x + m - 1) // m) * m


def _vmem_capacity_bytes():
    try:
        return int(pltpu.get_tpu_info().vmem_capacity_bytes)
    except Exception:
        return 64 * 1024 * 1024  # conservative (v7x-sized) fallback


# --------------------------------------------------------------------------
# Kernels
# --------------------------------------------------------------------------
def _ffn_resident_kernel(x_ref, w1_ref, b1_ref, w2_ref, b2_ref, g_ref, beta_ref,
                         o_ref, *, eps, inv_d, mxu_dtype):
    x = x_ref[...]
    # ---- w_1: MXU matmul (operands in mxu_dtype, f32 accumulation) ----
    h = jnp.dot(x.astype(mxu_dtype), w1_ref[...].astype(mxu_dtype),
                preferred_element_type=jnp.float32)
    h = h + b1_ref[...].astype(jnp.float32)
    # ---- SiLU (f32; sigmoid on the EUP) ----
    h = h * jax.nn.sigmoid(h)
    # dropout: eval-time identity
    # ---- w_2 ----
    y = jnp.dot(h.astype(mxu_dtype), w2_ref[...].astype(mxu_dtype),
                preferred_element_type=jnp.float32)
    z = y + b2_ref[...].astype(jnp.float32) + x.astype(jnp.float32)
    # ---- LayerNorm: single fused reduction pass (sum & sum-of-squares) ----
    s1 = jnp.sum(z, axis=-1, keepdims=True)
    s2 = jnp.sum(z * z, axis=-1, keepdims=True)
    mean = s1 * inv_d
    var = jnp.maximum(s2 * inv_d - mean * mean, 0.0)
    out = (z - mean) * jax.lax.rsqrt(var + eps)
    out = out * g_ref[...].astype(jnp.float32) + beta_ref[...].astype(jnp.float32)
    o_ref[...] = out.astype(o_ref.dtype)


def _ffn_tiled_kernel(x_ref, w1_ref, b1_ref, w2_ref, b2_ref, g_ref, beta_ref,
                      o_ref, acc_ref, *, eps, inv_d, mxu_dtype):
    j = pl.program_id(1)

    @pl.when(j == 0)
    def _():
        acc_ref[...] = jnp.zeros_like(acc_ref)

    # ---- w_1 slice ----
    h = jnp.dot(x_ref[...].astype(mxu_dtype), w1_ref[...].astype(mxu_dtype),
                preferred_element_type=jnp.float32)
    h = h + b1_ref[...].astype(jnp.float32)
    # ---- SiLU ----
    h = h * jax.nn.sigmoid(h)
    # ---- partial w_2, accumulate in f32 scratch ----
    acc_ref[...] += jnp.dot(h.astype(mxu_dtype), w2_ref[...].astype(mxu_dtype),
                            preferred_element_type=jnp.float32)

    # ---- epilogue on last inner step: bias + residual + LayerNorm ----
    @pl.when(j == pl.num_programs(1) - 1)
    def _():
        z = (acc_ref[...] + b2_ref[...].astype(jnp.float32)
             + x_ref[...].astype(jnp.float32))
        s1 = jnp.sum(z, axis=-1, keepdims=True)
        s2 = jnp.sum(z * z, axis=-1, keepdims=True)
        mean = s1 * inv_d
        var = jnp.maximum(s2 * inv_d - mean * mean, 0.0)
        out = (z - mean) * jax.lax.rsqrt(var + eps)
        out = (out * g_ref[...].astype(jnp.float32)
               + beta_ref[...].astype(jnp.float32))
        o_ref[...] = out.astype(o_ref.dtype)


# --------------------------------------------------------------------------
# Wrapper
# --------------------------------------------------------------------------
def feed_forward(x, w1, b1, w2, b2, gamma, beta, *, eps=1e-12,
                 tm=None, tn=None, matmul_dtype=None):
    """x: [batch, seq, d_model] -> same shape/dtype.

    w1: [d_model, inner]  (transposed vs. PyTorch's Linear weight)
    b1: [inner];  w2: [inner, d_model];  b2, gamma, beta: [d_model]
    matmul_dtype: optional MXU operand dtype (e.g. jnp.bfloat16); accumulation
      and bias/SiLU/LayerNorm math stay in f32.
    """
    batch, seq, d_model = x.shape
    inner = w1.shape[1]
    n = batch * seq
    x2d = x.reshape(n, d_model)

    mxu_dtype = jnp.dtype(matmul_dtype) if matmul_dtype is not None else x.dtype
    xb = jnp.dtype(x.dtype).itemsize
    wb = jnp.dtype(w1.dtype).itemsize

    # ---- per-generation targets ------------------------------------------
    vmem_cap = _vmem_capacity_bytes()
    big_vmem = vmem_cap >= 100 * 1024 * 1024
    if big_vmem:                              # v5e / v6e: 128 MiB VMEM
        tm_target, tn_target = 1024, 512
        vmem_limit = 100 * 1024 * 1024
    else:                                     # v7x: 64 MiB per TensorCore
        tm_target, tn_target = 512, 256
        vmem_limit = 44 * 1024 * 1024
    budget = int(vmem_limit * 0.80)           # headroom for compiler internals

    # ---- row tile ----------------------------------------------------------
    auto_tm = tm is None
    if auto_tm:
        n_tiles = max(1, pl.cdiv(n, tm_target))
        if (not big_vmem) and n > 256 and n_tiles < 2:
            n_tiles = 2                       # keep both v7x TensorCores busy
        tm = min(_round_up(pl.cdiv(n, n_tiles), 8), _round_up(n, 8))
    tm = max(8, _round_up(tm, 8))

    # ---- weight-resident fast path feasibility -----------------------------
    def _resident_vmem(tm_):
        weights = 2 * (d_model * inner + inner * d_model) * wb    # double-buffered
        params = 2 * (inner + 3 * d_model) * 4
        act = 2 * tm_ * d_model * (xb + xb)                       # x + out tiles
        interm = tm_ * inner * 4 + 2 * tm_ * d_model * 4          # live f32 values
        return weights + params + act + interm

    use_resident = False
    if tn is None:
        if _resident_vmem(tm) <= budget:
            use_resident = True
        elif auto_tm and _resident_vmem(256) <= budget:
            tm = min(tm, 256)
            use_resident = True

    b2_2d = b2.reshape(1, d_model)
    g_2d = gamma.reshape(1, d_model)
    beta_2d = beta.reshape(1, d_model)

    if use_resident:
        # -------------------- weight-resident path --------------------------
        n_pad = _round_up(n, tm)
        if n_pad != n:
            x2d = jnp.pad(x2d, ((0, n_pad - n), (0, 0)))
        b1_2d = b1.reshape(1, inner)

        cost = pl.CostEstimate(
            flops=int(4 * n_pad * d_model * inner),
            transcendentals=int(n_pad * inner),
            bytes_accessed=int(2 * n_pad * d_model * xb
                               + 2 * d_model * inner * wb
                               + (inner + 3 * d_model) * 4))

        kernel = functools.partial(_ffn_resident_kernel, eps=eps,
                                   inv_d=1.0 / d_model, mxu_dtype=mxu_dtype)
        out2d = pl.pallas_call(
            kernel,
            out_shape=jax.ShapeDtypeStruct((n_pad, d_model), x.dtype),
            grid_spec=pltpu.PrefetchScalarGridSpec(
                num_scalar_prefetch=0,
                grid=(n_pad // tm,),
                in_specs=[
                    pl.BlockSpec((tm, d_model), lambda i: (i, 0)),      # x tile
                    pl.BlockSpec((d_model, inner), lambda i: (0, 0)),   # w1 (full)
                    pl.BlockSpec((1, inner), lambda i: (0, 0)),         # b1
                    pl.BlockSpec((inner, d_model), lambda i: (0, 0)),   # w2 (full)
                    pl.BlockSpec((1, d_model), lambda i: (0, 0)),       # b2
                    pl.BlockSpec((1, d_model), lambda i: (0, 0)),       # gamma
                    pl.BlockSpec((1, d_model), lambda i: (0, 0)),       # beta
                ],
                out_specs=pl.BlockSpec((tm, d_model), lambda i: (i, 0)),
            ),
            compiler_params=pltpu.CompilerParams(
                dimension_semantics=("parallel",),
                vmem_limit_bytes=vmem_limit,
            ),
            cost_estimate=cost,
        )(x2d, w1, b1_2d, w2, b2_2d, g_2d, beta_2d)
    else:
        # ------------------------- tiled path --------------------------------
        auto_tn = tn is None
        if auto_tn:
            tn = min(tn_target, _round_up(inner, 128))
        if tn != inner:
            tn = _round_up(tn, 128)           # lane-aligned inner tile

        def _tiled_vmem(tm_, tn_):
            acc = tm_ * d_model * 4
            act = 2 * tm_ * d_model * (xb + xb)
            wts = 2 * (d_model * tn_ + tn_ * d_model) * wb + 2 * tn_ * 4
            params = 2 * 3 * d_model * 4
            interm = tm_ * tn_ * 4
            return acc + act + wts + params + interm

        if auto_tm:
            while _tiled_vmem(tm, tn) > budget and tm > 256:
                tm = max(256, _round_up(tm // 2, 8))
        if auto_tn:
            while _tiled_vmem(tm, tn) > budget and tn > 128:
                tn = max(128, tn // 2)

        inner_pad = inner if tn == inner else _round_up(inner, tn)
        if inner_pad != inner:
            # zero-pad hidden dim: SiLU(0)=0 and zero w2 rows contribute nothing
            w1 = jnp.pad(w1, ((0, 0), (0, inner_pad - inner)))
            b1 = jnp.pad(b1, ((0, inner_pad - inner),))
            w2 = jnp.pad(w2, ((0, inner_pad - inner), (0, 0)))

        n_pad = _round_up(n, tm)
        if n_pad != n:
            x2d = jnp.pad(x2d, ((0, n_pad - n), (0, 0)))
        b1_2d = b1.reshape(1, inner_pad)

        row_tiles = n_pad // tm
        cost = pl.CostEstimate(
            flops=int(4 * n_pad * d_model * inner_pad),
            transcendentals=int(n_pad * inner_pad),
            bytes_accessed=int(2 * n_pad * d_model * xb
                               + row_tiles * 2 * d_model * inner_pad * wb
                               + (inner_pad + 3 * d_model) * 4))

        kernel = functools.partial(_ffn_tiled_kernel, eps=eps,
                                   inv_d=1.0 / d_model, mxu_dtype=mxu_dtype)
        out2d = pl.pallas_call(
            kernel,
            out_shape=jax.ShapeDtypeStruct((n_pad, d_model), x.dtype),
            grid_spec=pltpu.PrefetchScalarGridSpec(
                num_scalar_prefetch=0,
                grid=(row_tiles, inner_pad // tn),
                in_specs=[
                    pl.BlockSpec((tm, d_model), lambda i, j: (i, 0)),   # x tile
                    pl.BlockSpec((d_model, tn), lambda i, j: (0, j)),   # w1 slice
                    pl.BlockSpec((1, tn), lambda i, j: (0, j)),         # b1 slice
                    pl.BlockSpec((tn, d_model), lambda i, j: (j, 0)),   # w2 slice
                    pl.BlockSpec((1, d_model), lambda i, j: (0, 0)),    # b2
                    pl.BlockSpec((1, d_model), lambda i, j: (0, 0)),    # gamma
                    pl.BlockSpec((1, d_model), lambda i, j: (0, 0)),    # beta
                ],
                out_specs=pl.BlockSpec((tm, d_model), lambda i, j: (i, 0)),
                scratch_shapes=[pltpu.VMEM((tm, d_model), jnp.float32)],
            ),
            compiler_params=pltpu.CompilerParams(
                dimension_semantics=("parallel", "arbitrary"),
                vmem_limit_bytes=vmem_limit,
            ),
            cost_estimate=cost,
        )(x2d, w1, b1_2d, w2, b2_2d, g_2d, beta_2d)

    if n_pad != n:
        out2d = out2d[:n]
    return out2d.reshape(batch, seq, d_model)


# --------------------------------------------------------------------------
# Reference & self-test
# --------------------------------------------------------------------------
def _reference(x, w1, b1, w2, b2, gamma, beta, eps=1e-12):
    h = x @ w1 + b1
    h = h * jax.nn.sigmoid(h)
    y = h @ w2 + b2
    z = y + x
    mean = jnp.mean(z, axis=-1, keepdims=True)
    var = jnp.mean((z - mean) ** 2, axis=-1, keepdims=True)
    return (z - mean) * jax.lax.rsqrt(var + eps) * gamma + beta


if __name__ == "__main__":
    key = jax.random.PRNGKey(0)
    keys = jax.random.split(key, 6)

    def make_params(k, d_model, inner):
        k1, k2, k3, k4 = jax.random.split(k, 4)
        lim1 = 1.0 / (d_model ** 0.5)
        lim2 = 1.0 / (inner ** 0.5)
        w1 = jax.random.uniform(k1, (d_model, inner), jnp.float32, -lim1, lim1)
        b1 = jax.random.uniform(k2, (inner,), jnp.float32, -lim1, lim1)
        w2 = jax.random.uniform(k3, (inner, d_model), jnp.float32, -lim2, lim2)
        b2 = jax.random.uniform(k4, (d_model,), jnp.float32, -lim2, lim2)
        return w1, b1, w2, b2, jnp.ones((d_model,), jnp.float32), jnp.zeros((d_model,), jnp.float32)

    # Case 1: weight-resident fast path (d_model=32, inner=64, batch=2, seq=8).
    d_model, inner = 32, 64
    p = make_params(keys[0], d_model, inner)
    x = jax.random.normal(keys[1], (2, 8, d_model), jnp.float32)
    out = jax.block_until_ready(feed_forward(x, *p))
    ref = _reference(x, *p)
    assert out.shape == x.shape
    assert jnp.allclose(out, ref, atol=1e-4, rtol=1e-4), "mismatch (case 1)"

    # Case 2: remainder rows (N=15 -> padded) + multi-row-tile resident grid.
    x2 = jax.random.normal(keys[2], (3, 5, d_model), jnp.float32)
    out2 = jax.block_until_ready(feed_forward(x2, *p, tm=8))
    ref2 = _reference(x2, *p)
    assert out2.shape == x2.shape
    assert jnp.allclose(out2, ref2, atol=1e-4, rtol=1e-4), "mismatch (case 2)"

    # Case 3: tiled path — inner=192 padded to 256, two inner steps (tn=128),
    # exercises the f32 accumulator scratch and the pl.when epilogue.
    d3, i3 = 128, 192
    p3 = make_params(keys[3], d3, i3)
    x3 = jax.random.normal(keys[4], (2, 16, d3), jnp.float32)
    out3 = jax.block_until_ready(feed_forward(x3, *p3, tn=128))
    ref3 = _reference(x3, *p3)
    assert out3.shape == x3.shape
    assert jnp.allclose(out3, ref3, atol=1e-4, rtol=1e-4), "mismatch (case 3)"

    # Case 4: bf16 MXU operands (f32 accumulation and vector math).
    out4 = jax.block_until_ready(feed_forward(x, *p, matmul_dtype=jnp.bfloat16))
    assert jnp.allclose(out4, ref, atol=1e-1, rtol=1e-1), "mismatch (case 4)"

    print("KERNEL_OK")
</pallas_src>

<mosaic_0001>
module attributes {stable_mosaic.version = 11 : i64} {
  func.func @_ffn_resident_kernel(%arg0: i32, %arg1: memref<16x32xf32, #tpu.memory_space<vmem>>, %arg2: memref<32x64xf32, #tpu.memory_space<vmem>>, %arg3: memref<1x64xf32, #tpu.memory_space<vmem>>, %arg4: memref<64x32xf32, #tpu.memory_space<vmem>>, %arg5: memref<1x32xf32, #tpu.memory_space<vmem>>, %arg6: memref<1x32xf32, #tpu.memory_space<vmem>>, %arg7: memref<1x32xf32, #tpu.memory_space<vmem>>, %arg8: memref<16x32xf32, #tpu.memory_space<vmem>>) attributes {dimension_semantics = [#tpu.dimension_semantics<parallel>], iteration_bounds = array<i64: 1>, scalar_prefetch = 0 : i64, scratch_operands = 0 : i64, tpu.core_type = #tpu.core_type<tc>, window_params = [{transform_indices = @transform_0, window_bounds = array<i64: 16, 32>}, {pipeline_mode = #tpu.pipeline_mode<synchronous>, transform_indices = @transform_1, window_bounds = array<i64: 32, 64>}, {pipeline_mode = #tpu.pipeline_mode<synchronous>, transform_indices = @transform_2, window_bounds = array<i64: 1, 64>}, {pipeline_mode = #tpu.pipeline_mode<synchronous>, transform_indices = @transform_3, window_bounds = array<i64: 64, 32>}, {pipeline_mode = #tpu.pipeline_mode<synchronous>, transform_indices = @transform_4, window_bounds = array<i64: 1, 32>}, {pipeline_mode = #tpu.pipeline_mode<synchronous>, transform_indices = @transform_5, window_bounds = array<i64: 1, 32>}, {pipeline_mode = #tpu.pipeline_mode<synchronous>, transform_indices = @transform_6, window_bounds = array<i64: 1, 32>}, {transform_indices = @transform_7, window_bounds = array<i64: 16, 32>}]} {
    %c0 = arith.constant 0 : index
    %c0_0 = arith.constant 0 : index
    %0 = vector.load %arg1[%c0, %c0_0] : memref<16x32xf32, #tpu.memory_space<vmem>>, vector<16x32xf32>
    %c0_1 = arith.constant 0 : index
    %c0_2 = arith.constant 0 : index
    %1 = vector.load %arg2[%c0_1, %c0_2] : memref<32x64xf32, #tpu.memory_space<vmem>>, vector<32x64xf32>
    %cst = arith.constant dense<0.000000e+00> : vector<16x64xf32>
    %2 = tpu.matmul %0, %1, %cst {dimension_numbers = #tpu.dot_dimension_numbers<[1], [0], [0], [1], [0, 0, 1, 1], [], []>} : vector<16x32xf32>, vector<32x64xf32>, vector<16x64xf32> -> vector<16x64xf32>
    %c0_3 = arith.constant 0 : index
    %c0_4 = arith.constant 0 : index
    %3 = vector.load %arg3[%c0_3, %c0_4] : memref<1x64xf32, #tpu.memory_space<vmem>>, vector<1x64xf32>
    %4 = vector.broadcast %3 : vector<1x64xf32> to vector<16x64xf32>
    %5 = arith.addf %2, %4 : vector<16x64xf32>
    %6 = arith.negf %5 : vector<16x64xf32>
    %7 = math.exp %6 : vector<16x64xf32>
    %cst_5 = arith.constant 1.000000e+00 : f32
    %8 = vector.broadcast %cst_5 : f32 to vector<16x64xf32>
    %9 = arith.addf %8, %7 : vector<16x64xf32>
    %10 = arith.divf %8, %9 : vector<16x64xf32>
    %11 = arith.mulf %5, %10 : vector<16x64xf32>
    %c0_6 = arith.constant 0 : index
    %c0_7 = arith.constant 0 : index
    %12 = vector.load %arg4[%c0_6, %c0_7] : memref<64x32xf32, #tpu.memory_space<vmem>>, vector<64x32xf32>
    %cst_8 = arith.constant dense<0.000000e+00> : vector<16x32xf32>
    %13 = tpu.matmul %11, %12, %cst_8 {dimension_numbers = #tpu.dot_dimension_numbers<[1], [0], [0], [1], [0, 0, 1, 1], [], []>} : vector<16x64xf32>, vector<64x32xf32>, vector<16x32xf32> -> vector<16x32xf32>
    %c0_9 = arith.constant 0 : index
    %c0_10 = arith.constant 0 : index
    %14 = vector.load %arg5[%c0_9, %c0_10] : memref<1x32xf32, #tpu.memory_space<vmem>>, vector<1x32xf32>
    %15 = vector.broadcast %14 : vector<1x32xf32> to vector<16x32xf32>
    %16 = arith.addf %13, %15 : vector<16x32xf32>
    %17 = arith.addf %16, %0 : vector<16x32xf32>
    %cst_11 = arith.constant dense<0.000000e+00> : vector<16xf32>
    %18 = vector.multi_reduction <add>, %17, %cst_11 [1] : vector<16x32xf32> to vector<16xf32>
    %19 = vector.shape_cast %18 : vector<16xf32> to vector<16x1xf32>
    %20 = arith.mulf %17, %17 : vector<16x32xf32>
    %cst_12 = arith.constant dense<0.000000e+00> : vector<16xf32>
    %21 = vector.multi_reduction <add>, %20, %cst_12 [1] : vector<16x32xf32> to vector<16xf32>
    %22 = vector.shape_cast %21 : vector<16xf32> to vector<16x1xf32>
    %cst_13 = arith.constant 3.125000e-02 : f32
    %23 = vector.broadcast %cst_13 : f32 to vector<16x1xf32>
    %24 = arith.mulf %19, %23 : vector<16x1xf32>
    %cst_14 = arith.constant 3.125000e-02 : f32
    %25 = vector.broadcast %cst_14 : f32 to vector<16x1xf32>
    %26 = arith.mulf %22, %25 : vector<16x1xf32>
    %27 = arith.mulf %24, %24 : vector<16x1xf32>
    %28 = arith.subf %26, %27 : vector<16x1xf32>
    %cst_15 = arith.constant 0.000000e+00 : f32
    %29 = vector.broadcast %cst_15 : f32 to vector<16x1xf32>
    %30 = arith.maximumf %28, %29 : vector<16x1xf32>
    %31 = vector.broadcast %24 : vector<16x1xf32> to vector<16x32xf32>
    %32 = arith.subf %17, %31 : vector<16x32xf32>
    %cst_16 = arith.constant 9.99999996E-13 : f32
    %33 = vector.broadcast %cst_16 : f32 to vector<16x1xf32>
    %34 = arith.addf %30, %33 : vector<16x1xf32>
    %35 = math.rsqrt %34 : vector<16x1xf32>
    %36 = vector.broadcast %35 : vector<16x1xf32> to vector<16x32xf32>
    %37 = arith.mulf %32, %36 : vector<16x32xf32>
    %c0_17 = arith.constant 0 : index
    %c0_18 = arith.constant 0 : index
    %38 = vector.load %arg6[%c0_17, %c0_18] : memref<1x32xf32, #tpu.memory_space<vmem>>, vector<1x32xf32>
    %39 = vector.broadcast %38 : vector<1x32xf32> to vector<16x32xf32>
    %40 = arith.mulf %37, %39 : vector<16x32xf32>
    %c0_19 = arith.constant 0 : index
    %c0_20 = arith.constant 0 : index
    %41 = vector.load %arg7[%c0_19, %c0_20] : memref<1x32xf32, #tpu.memory_space<vmem>>, vector<1x32xf32>
    %42 = vector.broadcast %41 : vector<1x32xf32> to vector<16x32xf32>
    %43 = arith.addf %40, %42 : vector<16x32xf32>
    %c0_21 = arith.constant 0 : index
    %c0_22 = arith.constant 0 : index
    %44 = vector.load %arg8[%c0_21, %c0_22] : memref<16x32xf32, #tpu.memory_space<vmem>>, vector<16x32xf32>
    tpu.vector_store %arg8[%c0_21, %c0_22], %43 {strides = array<i32>} : memref<16x32xf32, #tpu.memory_space<vmem>>, vector<16x32xf32>,
    return
  }
  func.func @transform_0(%arg0: i32) -> (i32, i32) {
    %c0_i32 = arith.constant 0 : i32
    %c0_i32_0 = arith.constant 0 : i32
    return %arg0, %c0_i32 : i32, i32
  }
  func.func @transform_1(%arg0: i32) -> (i32, i32) {
    %c0_i32 = arith.constant 0 : i32
    %c0_i32_0 = arith.constant 0 : i32
    %c0_i32_1 = arith.constant 0 : i32
    return %c0_i32, %c0_i32_0 : i32, i32
  }
  func.func @transform_2(%arg0: i32) -> (i32, i32) {
    %c0_i32 = arith.constant 0 : i32
    %c0_i32_0 = arith.constant 0 : i32
    %c0_i32_1 = arith.constant 0 : i32
    return %c0_i32, %c0_i32_0 : i32, i32
  }
  func.func @transform_3(%arg0: i32) -> (i32, i32) {
    %c0_i32 = arith.constant 0 : i32
    %c0_i32_0 = arith.constant 0 : i32
    %c0_i32_1 = arith.constant 0 : i32
    return %c0_i32, %c0_i32_0 : i32, i32
  }
  func.func @transform_4(%arg0: i32) -> (i32, i32) {
    %c0_i32 = arith.constant 0 : i32
    %c0_i32_0 = arith.constant 0 : i32
    %c0_i32_1 = arith.constant 0 : i32
    return %c0_i32, %c0_i32_0 : i32, i32
  }
  func.func @transform_5(%arg0: i32) -> (i32, i32) {
    %c0_i32 = arith.constant 0 : i32
    %c0_i32_0 = arith.constant 0 : i32
    %c0_i32_1 = arith.constant 0 : i32
    return %c0_i32, %c0_i32_0 : i32, i32
  }
  func.func @transform_6(%arg0: i32) -> (i32, i32) {
    %c0_i32 = arith.constant 0 : i32
    %c0_i32_0 = arith.constant 0 : i32
    %c0_i32_1 = arith.constant 0 : i32
    return %c0_i32, %c0_i32_0 : i32, i32
  }
  func.func @transform_7(%arg0: i32) -> (i32, i32) {
    %c0_i32 = arith.constant 0 : i32
    %c0_i32_0 = arith.constant 0 : i32
    return %arg0, %c0_i32 : i32, i32
  }
}

</mosaic_0001>

<bundles_post_ra>
// kernel: tpu_custom_call.1
= control target key start
LH: loop header
LB: loop body
LE: loop exit
PB: predicated region body
PF: predicated region fallthrough
CT: control target
= control target key end

     0   :  { %vm40_vm0 = vcmask 261120   ;;  %s508_s0 = inlined_call_operand.vmem [shape: f32[16,32], index: 0, kind: input, shape index: {}]   ;;  %s509_s1 = inlined_call_operand.vmem [shape: f32[32,64], index: 1, kind: input, shape index: {}]   ;;  %s510_s2 = inlined_call_operand.vmem [shape: f32[1,64], index: 2, kind: input, shape index: {}]   ;;  %s511_s3 = inlined_call_operand.vmem [shape: f32[64,32], index: 3, kind: input, shape index: {}]   ;;  %s512_s4 = inlined_call_operand.vmem [shape: f32[1,32], index: 4, kind: input, shape index: {}]   ;;  %s513_s5 = inlined_call_operand.vmem [shape: f32[1,32], index: 5, kind: input, shape index: {}]   ;;  %s514_s6 = inlined_call_operand.vmem [shape: f32[1,32], index: 6, kind: input, shape index: {}]   ;;  %s515_s7 = inlined_call_operand.hbm [shape: f32[16,32], index: 7, kind: output, shape index: {}]  }
   0x1   :  { %v32_v0 = vld [vmem:[%s509_s1 + $0x18] sm:$0xff]  ;;  %v31_v1 = vld [vmem:[%s509_s1 + $0x10] sm:$0xff]  ;;  %v448_v2 = vld [vmem:[%s508_s0] sm:$0xff] }
   0x2   :  { %329 = vmatprep.subr.mxu0 %v32_v0  ;;  %v30_v3 = vld [vmem:[%s509_s1 + $0x8] sm:$0xff]  ;;  %337 = vmatprep.mubr.msk.f32.mxu0 %vm40_vm0, %v448_v2 }
   0x3   :  { %330 = vmatpush3.msra.mxu0 %v32_v0 }
   0x4   :  { %12 = vsyncpa [#allocation3], 0  ;;  %331 = vmatprep.subr.mxu0 %v31_v1  ;;  %v29_v4 = vld [vmem:[%s509_s1] sm:$0xff]  ;;  %v28_v5 = vld [vmem:[%s508_s0 + $0x8] sm:$0xff]  ;;  %vm151_vm1 = vcmask 523264   ;;  %s396_s9 = smov [#allocation2]  }
   0x5   :  { %332 = vmatpush3.msra.mxu0 %v31_v1  ;;  %v143_v6 = vld [vmem:[%s511_s3 + $0x38] sm:$0xff]  ;;  %v142_v7 = vld [vmem:[%s511_s3 + $0x30] sm:$0xff]  ;;  %v141_v8 = vld [vmem:[%s511_s3 + $0x28] sm:$0xff]  ;;  %s292_s10 = sshll.u32 %s396_s9, 4  ;;  %s293_s10 = int_to_ptr.vmem [resolvable:$true] %s292_s10 }
   0x6   :  { %333 = vmatprep.subr.mxu0 %v30_v3  ;;  %340 = vmatprep.subr.mxu1 %v143_v6  ;;  %v140_v9 = vld [vmem:[%s511_s3 + $0x20] sm:$0xff]  ;;  %v139_v10 = vld [vmem:[%s511_s3 + $0x18] sm:$0xff]  ;;  %v138_v11 = vld [vmem:[%s511_s3 + $0x10] sm:$0xff]  ;;  %p379_p1 = scmp.lt.s32.totalorder %s293_s10, %s293_s10 }
   0x7   :  { %334 = vmatpush3.msra.mxu0 %v30_v3  ;;  %341 = vmatpush3.msra.mxu1 %v143_v6  ;;  %v137_v12 = vld [vmem:[%s511_s3 + $0x8] sm:$0xff]  ;;  %v136_v13 = vld [vmem:[%s511_s3] sm:$0xff] }
   0x8   :  { %335 = vmatprep.subr.mxu0 %v29_v4  ;;  %342 = vmatprep.subr.mxu1 %v142_v7  ;;  %v303_v14 = vld [vmem:[%s510_s2] ss:$0 sm:$0xff] }
   0x9   :  { %336 = vmatpush3.msra.mxu0 %v29_v4  ;;  %343 = vmatpush3.msra.mxu1 %v142_v7  ;;  %v308_v29 = vld [vmem:[%s512_s4] ss:$0 sm:$0xff] }
   0xa   :  { %338 = vmatmul.mubr.msk.f32.vlgmr.msra.gmra.mxu0 %vm40_vm0, %v28_v5  ;;  %344 = vmatprep.subr.mxu1 %v141_v8  ;;  %v311_v60 = vld [vmem:[%s513_s5] ss:$0 sm:$0xff]  ;;  %s374_s5 = scalar_lea.vmem %s293_s10, 256 }
   0xb   :  { %345 = vmatpush3.msra.mxu1 %v141_v8  ;;  %v312_v62 = vld [vmem:[%s514_s6] ss:$0 sm:$0xff]  ;;  %p375_p0 = scmp.ne.s32.totalorder %s293_s10, %s374_s5  ;;  %p380_p2 = scmp.lt.s32.totalorder %s374_s5, %s374_s5 }
   0xc   :  { %346 = vmatprep.subr.mxu1 %v140_v9 }
   0xd   :  { %347 = vmatpush3.msra.mxu1 %v140_v9  ;;  %p381_p3 = por %p380_p2, %p379_p1 }
   0xe   :  { %348 = vmatprep.subr.mxu1 %v139_v10 }
   0xf   :  { %349 = vmatpush3.msra.mxu1 %v139_v10  ;;  %p382_p4 = pnand %p381_p3, %p375_p0 }
  0x10   :  { %350 = vmatprep.subr.mxu1 %v138_v11 }
  0x11   :  { %351 = vmatpush3.msra.mxu1 %v138_v11 }
  0x12   :  { %352 = vmatprep.subr.mxu1 %v137_v12 }
  0x13   :  { %353 = vmatpush3.msra.mxu1 %v137_v12 }
  0x14   :  { %354 = vmatprep.subr.mxu1 %v136_v13 }
  0x15   :  { %355 = vmatpush3.msra.mxu1 %v136_v13 }
  0xca   :  { %v339_v15 = vpop.f32.mrf.mxu0 }
  0xcb   :  { %v119_v16 = vadd.f32 %v339_v15, %v303_v14 }
  0xcc   :  { %v113_v17 = vpop.f32.mrf.mxu0 }
  0xcd   :  { %v307_v18 = vmul.f32 -1.442695, %v119_v16  ;;  %v114_v19 = vadd.f32 %v303_v14, %v113_v17 }
  0xcf   :  { %362 = vpow2.f32 %v307_v18  ;;  %v306_v20 = vmul.f32 -1.442695, %v114_v19 }
  0xd1   :  { %364 = vpow2.f32 %v306_v20 }
  0xdc   :  { %v363_v21 = vpop.eup %362 }
  0xdd   :  { %v129_v22 = vadd.f32 1.0, %v363_v21 }
  0xde   :  { %v365_v23 = vpop.eup %364 }
  0xdf   :  { %v128_v24 = vadd.f32 1.0, %v365_v23  ;;  %366 = vrcp.f32 %v129_v22 }
  0xe1   :  { %368 = vrcp.f32 %v128_v24 }
  0xec   :  { %v367_v25 = vpop.eup %366 }
  0xed   :  { %v135_v28 = vmul.f32 %v367_v25, %v119_v16 }
  0xee   :  { %v369_v26 = vpop.eup %368 }
  0xef   :  { %v134_v27 = vmul.f32 %v369_v26, %v114_v19 }
  0xf1   :  { %356 = vmatprep.mubr.msk.f32.mxu1 %vm151_vm1, %v134_v27 }
  0xf2   :  { %357 = vmatmul.mubr.msk.f32.vlgmr.msra.gmra.mxu1 %vm151_vm1, %v135_v28 }
 0x1b2   :  { %v358_v30 = vpop.f32.mrf.mxu1 }
 0x1b3   :  { %v230_v31 = vadd.f32 %v358_v30, %v308_v29 }
 0x1b4   :  { %v224_v32 = vpop.f32.mrf.mxu1 }
 0x1b5   :  { %v225_v33 = vadd.f32 %v308_v29, %v224_v32  ;;  %v234_v34 = vadd.f32 %v230_v31, %v28_v5 }
 0x1b7   :  { %v233_v35 = vadd.f32 %v225_v33, %v448_v2  ;;  %v242_v39 = vmul.f32 %v234_v34, %v234_v34  ;;  %v238_v40 = vsel %vm40_vm0, %v234_v34, 0.0 }
 0x1b9   :  { %v235_v36 = vsel %vm40_vm0, %v233_v35, 0.0  ;;  %v241_v37 = vmul.f32 %v233_v35, %v233_v35  ;;  %v246_v41 = vsel %vm40_vm0, %v242_v39, 0.0 }
 0x1ba   :  { %236 = vadd.xlane.f32.xlu0 %v235_v36 }
 0x1bb   :  { %v243_v38 = vsel %vm40_vm0, %v241_v37, 0.0 }
 0x1bc   :  { %244 = vadd.xlane.f32.xlu1 %v243_v38 }
 0x1be   :  { %239 = vadd.xlane.f32.xlu0 %v238_v40 }
 0x1c0   :  { %247 = vadd.xlane.f32.xlu1 %v246_v41 }
 0x243   :  { %v237_v42 = vpop.xlane.xlu0 %236 }
 0x244   :  { %v249_v43 = vmul.f32 0.03125, %v237_v42 }
 0x245   :  { %v245_v44 = vpop.xlane.xlu1 %244 }
 0x246   :  { %v253_v45 = vmul.f32 %v249_v43, %v249_v43  ;;  %v251_v46 = vmul.f32 0.03125, %v245_v44  ;;  %v259_v58 = vsub.f32 %v233_v35, %v249_v43 }
 0x247   :  { %v240_v47 = vpop.xlane.xlu0 %239 }
 0x248   :  { %v255_v48 = vsub.f32 %v251_v46, %v253_v45  ;;  %v250_v49 = vmul.f32 0.03125, %v240_v47 }
 0x249   :  { %v248_v50 = vpop.xlane.xlu1 %247 }
 0x24a   :  { %v257_v51 = vmax.f32 %v255_v48, 0.0  ;;  %v254_v52 = vmul.f32 %v250_v49, %v250_v49  ;;  %v252_v53 = vmul.f32 0.03125, %v248_v50  ;;  %v260_v63 = vsub.f32 %v234_v34, %v250_v49 }
 0x24c   :  { %v261_v54 = vadd.f32 1e-12, %v257_v51  ;;  %v256_v55 = vsub.f32 %v252_v53, %v254_v52 }
 0x24e   :  { %370 = vrsqrt.f32 %v261_v54  ;;  %v258_v56 = vmax.f32 %v256_v55, 0.0 }
 0x250   :  { %v262_v57 = vadd.f32 1e-12, %v258_v56 }
 0x252   :  { %372 = vrsqrt.f32 %v262_v57 }
 0x25b   :  { %v371_v59 = vpop.eup %370 }
 0x25c   :  { %v265_v61 = vmul.f32 %v371_v59, %v259_v58 }
 0x25e   :  { %v274_v0 = vmul.f32 %v311_v60, %v265_v61 }
 0x25f   :  { %v373_v1 = vpop.eup %372 }
 0x260   :  { %v266_v2 = vmul.f32 %v373_v1, %v260_v63  ;;  %v283_v3 = vadd.f32 %v312_v62, %v274_v0 }
 0x262   :  { %v275_v4 = vmul.f32 %v311_v60, %v266_v2  ;;  %285 = vst.msk [vmem:[#allocation2] sm:$0xff] %vm40_vm0, %v283_v3 }
 0x264   :  { %v284_v5 = vadd.f32 %v312_v62, %v275_v4 }
 0x266   :  { %286 = vst.msk [vmem:[#allocation2 + $0x8] sm:$0xff] %vm40_vm0, %v284_v5 }
 0x267   :  { %385 = shalt.err (!%p382_p4)
}
 0x268   :  { %s397_s6 = smov 128   ;;  %s398_s11 = smov 8  }
 0x269   :  { %298 = dma.vmem_to_hbm [thread:$0]  %s293_s10, 256, %s515_s7, [#allocation3], %s397_s6, %s397_s6, %s398_s11  }
 0x26a   :  { %394 = dma.done.wait [#allocation3], 256  }
 0x26b   :  { %395 = vsyncadd [#allocation3], 4294967040 }
 0x26c   :  { %302 = vsyncpa [#allocation3], 1 }

</bundles_post_ra>
